<compile_context>
chip_gen: v7x
topology: tpu7x:2x2x1
jax: 0.10.0
libtpu: 0.0.40
codegen_flags: <defaults>
</compile_context>

<pallas_src>
import functools

import jax
import jax.numpy as jnp
from jax.experimental import pallas as pl
from jax.experimental.pallas import tpu as pltpu


def _init_velocity_kernel(x_ref, mask_ref, w3_ref, b3_ref, w1_ref, b1_ref,
                          alpha_ref, out_ref, xstack_ref, *, width, lanes):
    """One grid step processes a chunk of images packed along the lane axis.

    x_ref     : (C, L)   input; lane = local_img * H*W + (h*W + w)
    mask_ref  : (9, L)   per-tap 0/1 boundary masks (grid-resident)
    w3_ref    : (C, 9C)  3x3 conv weights, col index = (ky*3+kx)*C + ci
    b3_ref    : (C, 1)   3x3 conv bias
    w1_ref    : (C, C)   1x1 conv weights (Cout, Cin)
    b1_ref    : (C, 1)   1x1 conv bias
    alpha_ref : (2,)     SMEM PReLU slopes
    out_ref   : (2C, L)  rows [0,C) = x copy, rows [C,2C) = branch output
    xstack_ref: (9C, L)  VMEM scratch holding the 9 shifted taps
    """
    C = x_ref.shape[0]
    x = x_ref[...]                                        # (C, L) f32

    # Build the 9 shifted taps; each is written directly into its C-row slot
    # of the scratch so the stores themselves form the (9C, L) stack.
    t = 0
    for dy in (-1, 0, 1):
        for dx in (-1, 0, 1):
            off = dy * width + dx
            if off == 0:
                tap = x
            else:
                # tap[:, p] = x[:, p + off]; lanes whose within-image position
                # falls off the HxW grid (including any cross-image / wrap
                # reads) are zeroed by the precomputed mask row.
                tap = pltpu.roll(x, (-off) % lanes, 1) * mask_ref[t:t + 1, :]
            xstack_ref[t * C:(t + 1) * C, :] = tap
            t += 1

    # Conv3x3 == one (C, 9C) @ (9C, L) matmul with a lane-dense result.
    h = jnp.dot(w3_ref[...], xstack_ref[...],
                preferred_element_type=jnp.float32)
    h = h + b3_ref[...]                                   # (C,1) over lanes
    h = jnp.where(h > 0, h, alpha_ref[0] * h)             # PReLU #1 (SMEM slope)

    # Conv1x1 == channel-mix matmul.
    h = jnp.dot(w1_ref[...], h, preferred_element_type=jnp.float32)
    h = h + b1_ref[...]
    h = jnp.where(h > 0, h, alpha_ref[1] * h)             # PReLU #2

    # Fused cat([x, out], channel dim): one dense (2C, L) lane-dense store.
    out_ref[...] = jnp.concatenate([x, h], axis=0).astype(out_ref.dtype)


def _pick_images_per_step(n, hw, target_lanes=2048):
    """Images per grid step: lane dim per step >= ~2K where possible."""
    per = max(1, min(n, max(1, target_lanes // max(hw, 1))))
    while per > 1 and n % per != 0:
        per -= 1
    if per < n and (per * hw) % 128 != 0:
        per = n   # fall back to one fat step: block == full array, no 128 rule
    return per


def _boundary_masks(height, width):
    """(9, H*W) 0/1 masks: tap t valid iff the shifted sample stays in-image."""
    hw = height * width
    hh = jnp.arange(hw, dtype=jnp.int32) // width
    ww = jnp.arange(hw, dtype=jnp.int32) % width
    rows = []
    for dy in (-1, 0, 1):
        for dx in (-1, 0, 1):
            valid = jnp.ones((hw,), dtype=jnp.bool_)
            if dy == -1:
                valid = valid & (hh >= 1)
            elif dy == 1:
                valid = valid & (hh <= height - 2)
            if dx == -1:
                valid = valid & (ww >= 1)
            elif dx == 1:
                valid = valid & (ww <= width - 2)
            rows.append(valid.astype(jnp.float32))
    return jnp.stack(rows, axis=0)


def initial_velocity_forward(x_nchw, params):
    """x_nchw: (N, C, H, W) float32. Returns (N, 2C, H, W)."""
    N, C, H, W = x_nchw.shape
    HW = H * W
    per = _pick_images_per_step(N, HW)
    L = per * HW
    steps = N // per

    # Batch-in-lanes layout: (C, N*HW).
    x_flat = jnp.transpose(x_nchw, (1, 0, 2, 3)).reshape(C, N * HW)

    # Per-tap boundary masks, tiled to the per-step lane width (grid-resident).
    mask = jnp.tile(_boundary_masks(H, W), (1, per))      # (9, L)

    # Tiny parameter repacking (PyTorch conv weights are (Cout, Cin, kH, kW)).
    w3r = jnp.transpose(params["w3"], (0, 2, 3, 1)).reshape(C, 9 * C)
    b3c = params["b3"].reshape(C, 1)
    w1m = params["w1"][:, :, 0, 0]                        # (Cout, Cin)
    b1c = params["b1"].reshape(C, 1)
    alphas = jnp.stack([params["a1"].reshape(()), params["a2"].reshape(())])

    # VMEM budget: double-buffered in/out/mask blocks + explicit (9C, L) tap
    # scratch + a few (C, L) temporaries, capped at ~45% of physical VMEM.
    blk = L * 4
    est = (2 * (C + 2 * C + 9) * blk                      # in + out + mask (x2)
           + 9 * C * blk                                  # tap scratch
           + 6 * C * blk                                  # h / tap temporaries
           + (9 * C * C + C * C + 2 * C + 2) * 4          # weights + slopes
           + (2 << 20))                                   # headroom
    try:
        vmem_cap = pltpu.get_tpu_info().vmem_capacity_bytes
    except Exception:  # conservative fallback = v7x per-TC capacity
        vmem_cap = 64 << 20
    vmem_limit = int(min(max(est, 16 << 20), int(0.45 * vmem_cap)))

    kernel = functools.partial(_init_velocity_kernel, width=W, lanes=L)

    out_flat = pl.pallas_call(
        kernel,
        out_shape=jax.ShapeDtypeStruct((2 * C, N * HW), jnp.float32),
        grid=(steps,),
        in_specs=[
            pl.BlockSpec((C, L), lambda b: (0, b)),               # x chunk
            pl.BlockSpec((9, L), lambda b: (0, 0)),               # masks (resident)
            pl.BlockSpec((C, 9 * C), lambda b: (0, 0)),           # w3
            pl.BlockSpec((C, 1), lambda b: (0, 0)),               # b3
            pl.BlockSpec((C, C), lambda b: (0, 0)),               # w1
            pl.BlockSpec((C, 1), lambda b: (0, 0)),               # b1
            pl.BlockSpec(memory_space=pltpu.MemorySpace.SMEM),    # PReLU slopes
        ],
        out_specs=pl.BlockSpec((2 * C, L), lambda b: (0, b)),
        scratch_shapes=[pltpu.VMEM((9 * C, L), jnp.float32)],
        compiler_params=pltpu.CompilerParams(
            dimension_semantics=("parallel",),
            vmem_limit_bytes=vmem_limit),
    )(x_flat, mask, w3r, b3c, w1m, b1c, alphas)

    return jnp.transpose(out_flat.reshape(2 * C, N, H, W), (1, 0, 2, 3))


def _reference_forward(x, params):
    """Pure-JAX reference (mirrors PyTorch semantics) for validation."""
    dn = ("NCHW", "OIHW", "NCHW")
    out = jax.lax.conv_general_dilated(x, params["w3"], (1, 1), "SAME",
                                       dimension_numbers=dn)
    out = out + params["b3"].reshape(1, -1, 1, 1)
    out = jnp.where(out > 0, out, params["a1"] * out)
    out = jax.lax.conv_general_dilated(out, params["w1"], (1, 1), "VALID",
                                       dimension_numbers=dn)
    out = out + params["b1"].reshape(1, -1, 1, 1)
    out = jnp.where(out > 0, out, params["a2"] * out)
    return jnp.concatenate([x, out], axis=1)


def make_params(channels, key):
    k = jax.random.split(key, 4)
    # deterministic synthetic init (shapes match nn.Conv2d / nn.PReLU defaults)
    w3 = jax.random.normal(k[0], (channels, channels, 3, 3), jnp.float32) * 0.1
    b3 = jax.random.normal(k[1], (channels,), jnp.float32) * 0.1
    w1 = jax.random.normal(k[2], (channels, channels, 1, 1), jnp.float32) * 0.1
    b1 = jax.random.normal(k[3], (channels,), jnp.float32) * 0.1
    a1 = jnp.array(0.25, jnp.float32)   # nn.PReLU() default single slope
    a2 = jnp.array(0.25, jnp.float32)
    return {"w3": w3, "b3": b3, "a1": a1, "w1": w1, "b1": b1, "a2": a2}


if __name__ == "__main__":
    key = jax.random.PRNGKey(0)
    kx, kp = jax.random.split(key)

    N, C, H, W = 2, 4, 16, 16
    x = jax.random.normal(kx, (N, C, H, W), jnp.float32)
    params = make_params(C, kp)

    fwd = jax.jit(initial_velocity_forward)
    out = jax.block_until_ready(fwd(x, params))

    ref = jax.block_until_ready(_reference_forward(x, params))

    assert out.shape == (N, 2 * C, H, W), out.shape
    assert jnp.allclose(out, ref, atol=5e-4, rtol=5e-4), \
        float(jnp.max(jnp.abs(out - ref)))

    print("KERNEL_OK")
</pallas_src>

<mosaic_0001>
module attributes {stable_mosaic.version = 11 : i64} {
  func.func @_init_velocity_kernel(%arg0: i32, %arg1: memref<4x512xf32, #tpu.memory_space<vmem>>, %arg2: memref<9x512xf32, #tpu.memory_space<vmem>>, %arg3: memref<4x36xf32, #tpu.memory_space<vmem>>, %arg4: memref<4x1xf32, #tpu.memory_space<vmem>>, %arg5: memref<4x4xf32, #tpu.memory_space<vmem>>, %arg6: memref<4x1xf32, #tpu.memory_space<vmem>>, %arg7: memref<2xf32, #tpu.memory_space<smem>>, %arg8: memref<8x512xf32, #tpu.memory_space<vmem>>, %arg9: memref<36x512xf32, #tpu.memory_space<vmem>>) attributes {dimension_semantics = [#tpu.dimension_semantics<parallel>], iteration_bounds = array<i64: 1>, scalar_prefetch = 0 : i64, scratch_operands = 1 : i64, tpu.core_type = #tpu.core_type<tc>, window_params = [{transform_indices = @transform_0, window_bounds = array<i64: 4, 512>}, {pipeline_mode = #tpu.pipeline_mode<synchronous>, transform_indices = @transform_1, window_bounds = array<i64: 9, 512>}, {pipeline_mode = #tpu.pipeline_mode<synchronous>, transform_indices = @transform_2, window_bounds = array<i64: 4, 36>}, {pipeline_mode = #tpu.pipeline_mode<synchronous>, transform_indices = @transform_3, window_bounds = array<i64: 4, 1>}, {pipeline_mode = #tpu.pipeline_mode<synchronous>, transform_indices = @transform_4, window_bounds = array<i64: 4, 4>}, {pipeline_mode = #tpu.pipeline_mode<synchronous>, transform_indices = @transform_5, window_bounds = array<i64: 4, 1>}, {transform_indices = @transform_6, window_bounds = array<i64: 2>}, {transform_indices = @transform_7, window_bounds = array<i64: 8, 512>}]} {
    %c0 = arith.constant 0 : index
    %c0_0 = arith.constant 0 : index
    %0 = vector.load %arg1[%c0, %c0_0] : memref<4x512xf32, #tpu.memory_space<vmem>>, vector<4x512xf32>
    %c17_i32 = arith.constant 17 : i32
    %1 = tpu.dynamic_rotate %0 by %c17_i32 dim 1 : vector<4x512xf32>, i32 -> vector<4x512xf32>
    %c0_1 = arith.constant 0 : index
    %c0_2 = arith.constant 0 : index
    %2 = vector.load %arg2[%c0_1, %c0_2] : memref<9x512xf32, #tpu.memory_space<vmem>>, vector<1x512xf32>
    %3 = vector.broadcast %2 : vector<1x512xf32> to vector<4x512xf32>
    %4 = arith.mulf %1, %3 : vector<4x512xf32>
    %c0_3 = arith.constant 0 : index
    %c0_4 = arith.constant 0 : index
    %5 = vector.load %arg9[%c0_3, %c0_4] : memref<36x512xf32, #tpu.memory_space<vmem>>, vector<4x512xf32>
    tpu.vector_store %arg9[%c0_3, %c0_4], %4 {strides = array<i32>} : memref<36x512xf32, #tpu.memory_space<vmem>>, vector<4x512xf32>,
    %c16_i32 = arith.constant 16 : i32
    %6 = tpu.dynamic_rotate %0 by %c16_i32 dim 1 : vector<4x512xf32>, i32 -> vector<4x512xf32>
    %c1 = arith.constant 1 : index
    %c0_5 = arith.constant 0 : index
    %7 = vector.load %arg2[%c1, %c0_5] : memref<9x512xf32, #tpu.memory_space<vmem>>, vector<1x512xf32>
    %8 = vector.broadcast %7 : vector<1x512xf32> to vector<4x512xf32>
    %9 = arith.mulf %6, %8 : vector<4x512xf32>
    %c4 = arith.constant 4 : index
    %c0_6 = arith.constant 0 : index
    %10 = vector.load %arg9[%c4, %c0_6] : memref<36x512xf32, #tpu.memory_space<vmem>>, vector<4x512xf32>
    tpu.vector_store %arg9[%c4, %c0_6], %9 {strides = array<i32>} : memref<36x512xf32, #tpu.memory_space<vmem>>, vector<4x512xf32>,
    %c15_i32 = arith.constant 15 : i32
    %11 = tpu.dynamic_rotate %0 by %c15_i32 dim 1 : vector<4x512xf32>, i32 -> vector<4x512xf32>
    %c2 = arith.constant 2 : index
    %c0_7 = arith.constant 0 : index
    %12 = vector.load %arg2[%c2, %c0_7] : memref<9x512xf32, #tpu.memory_space<vmem>>, vector<1x512xf32>
    %13 = vector.broadcast %12 : vector<1x512xf32> to vector<4x512xf32>
    %14 = arith.mulf %11, %13 : vector<4x512xf32>
    %c8 = arith.constant 8 : index
    %c0_8 = arith.constant 0 : index
    %15 = vector.load %arg9[%c8, %c0_8] : memref<36x512xf32, #tpu.memory_space<vmem>>, vector<4x512xf32>
    tpu.vector_store %arg9[%c8, %c0_8], %14 {strides = array<i32>} : memref<36x512xf32, #tpu.memory_space<vmem>>, vector<4x512xf32>,
    %c1_i32 = arith.constant 1 : i32
    %16 = tpu.dynamic_rotate %0 by %c1_i32 dim 1 : vector<4x512xf32>, i32 -> vector<4x512xf32>
    %c3 = arith.constant 3 : index
    %c0_9 = arith.constant 0 : index
    %17 = vector.load %arg2[%c3, %c0_9] : memref<9x512xf32, #tpu.memory_space<vmem>>, vector<1x512xf32>
    %18 = vector.broadcast %17 : vector<1x512xf32> to vector<4x512xf32>
    %19 = arith.mulf %16, %18 : vector<4x512xf32>
    %c12 = arith.constant 12 : index
    %c0_10 = arith.constant 0 : index
    %20 = vector.load %arg9[%c12, %c0_10] : memref<36x512xf32, #tpu.memory_space<vmem>>, vector<4x512xf32>
    tpu.vector_store %arg9[%c12, %c0_10], %19 {strides = array<i32>} : memref<36x512xf32, #tpu.memory_space<vmem>>, vector<4x512xf32>,
    %c16 = arith.constant 16 : index
    %c0_11 = arith.constant 0 : index
    %21 = vector.load %arg9[%c16, %c0_11] : memref<36x512xf32, #tpu.memory_space<vmem>>, vector<4x512xf32>
    tpu.vector_store %arg9[%c16, %c0_11], %0 {strides = array<i32>} : memref<36x512xf32, #tpu.memory_space<vmem>>, vector<4x512xf32>,
    %c511_i32 = arith.constant 511 : i32
    %22 = tpu.dynamic_rotate %0 by %c511_i32 dim 1 : vector<4x512xf32>, i32 -> vector<4x512xf32>
    %c5 = arith.constant 5 : index
    %c0_12 = arith.constant 0 : index
    %23 = vector.load %arg2[%c5, %c0_12] : memref<9x512xf32, #tpu.memory_space<vmem>>, vector<1x512xf32>
    %24 = vector.broadcast %23 : vector<1x512xf32> to vector<4x512xf32>
    %25 = arith.mulf %22, %24 : vector<4x512xf32>
    %c20 = arith.constant 20 : index
    %c0_13 = arith.constant 0 : index
    %26 = vector.load %arg9[%c20, %c0_13] : memref<36x512xf32, #tpu.memory_space<vmem>>, vector<4x512xf32>
    tpu.vector_store %arg9[%c20, %c0_13], %25 {strides = array<i32>} : memref<36x512xf32, #tpu.memory_space<vmem>>, vector<4x512xf32>,
    %c497_i32 = arith.constant 497 : i32
    %27 = tpu.dynamic_rotate %0 by %c497_i32 dim 1 : vector<4x512xf32>, i32 -> vector<4x512xf32>
    %c6 = arith.constant 6 : index
    %c0_14 = arith.constant 0 : index
    %28 = vector.load %arg2[%c6, %c0_14] : memref<9x512xf32, #tpu.memory_space<vmem>>, vector<1x512xf32>
    %29 = vector.broadcast %28 : vector<1x512xf32> to vector<4x512xf32>
    %30 = arith.mulf %27, %29 : vector<4x512xf32>
    %c24 = arith.constant 24 : index
    %c0_15 = arith.constant 0 : index
    %31 = vector.load %arg9[%c24, %c0_15] : memref<36x512xf32, #tpu.memory_space<vmem>>, vector<4x512xf32>
    tpu.vector_store %arg9[%c24, %c0_15], %30 {strides = array<i32>} : memref<36x512xf32, #tpu.memory_space<vmem>>, vector<4x512xf32>,
    %c496_i32 = arith.constant 496 : i32
    %32 = tpu.dynamic_rotate %0 by %c496_i32 dim 1 : vector<4x512xf32>, i32 -> vector<4x512xf32>
    %c7 = arith.constant 7 : index
    %c0_16 = arith.constant 0 : index
    %33 = vector.load %arg2[%c7, %c0_16] : memref<9x512xf32, #tpu.memory_space<vmem>>, vector<1x512xf32>
    %34 = vector.broadcast %33 : vector<1x512xf32> to vector<4x512xf32>
    %35 = arith.mulf %32, %34 : vector<4x512xf32>
    %c28 = arith.constant 28 : index
    %c0_17 = arith.constant 0 : index
    %36 = vector.load %arg9[%c28, %c0_17] : memref<36x512xf32, #tpu.memory_space<vmem>>, vector<4x512xf32>
    tpu.vector_store %arg9[%c28, %c0_17], %35 {strides = array<i32>} : memref<36x512xf32, #tpu.memory_space<vmem>>, vector<4x512xf32>,
    %c495_i32 = arith.constant 495 : i32
    %37 = tpu.dynamic_rotate %0 by %c495_i32 dim 1 : vector<4x512xf32>, i32 -> vector<4x512xf32>
    %c8_18 = arith.constant 8 : index
    %c0_19 = arith.constant 0 : index
    %38 = vector.load %arg2[%c8_18, %c0_19] : memref<9x512xf32, #tpu.memory_space<vmem>>, vector<1x512xf32>
    %39 = vector.broadcast %38 : vector<1x512xf32> to vector<4x512xf32>
    %40 = arith.mulf %37, %39 : vector<4x512xf32>
    %c32 = arith.constant 32 : index
    %c0_20 = arith.constant 0 : index
    %41 = vector.load %arg9[%c32, %c0_20] : memref<36x512xf32, #tpu.memory_space<vmem>>, vector<4x512xf32>
    tpu.vector_store %arg9[%c32, %c0_20], %40 {strides = array<i32>} : memref<36x512xf32, #tpu.memory_space<vmem>>, vector<4x512xf32>,
    %c0_21 = arith.constant 0 : index
    %c0_22 = arith.constant 0 : index
    %42 = vector.load %arg3[%c0_21, %c0_22] : memref<4x36xf32, #tpu.memory_space<vmem>>, vector<4x36xf32>
    %c0_23 = arith.constant 0 : index
    %c0_24 = arith.constant 0 : index
    %43 = vector.load %arg9[%c0_23, %c0_24] : memref<36x512xf32, #tpu.memory_space<vmem>>, vector<36x512xf32>
    %cst = arith.constant dense<0.000000e+00> : vector<4x512xf32>
    %44 = tpu.matmul %42, %43, %cst {dimension_numbers = #tpu.dot_dimension_numbers<[1], [0], [0], [1], [0, 0, 1, 1], [], []>} : vector<4x36xf32>, vector<36x512xf32>, vector<4x512xf32> -> vector<4x512xf32>
    %c0_25 = arith.constant 0 : index
    %c0_26 = arith.constant 0 : index
    %45 = vector.load %arg4[%c0_25, %c0_26] : memref<4x1xf32, #tpu.memory_space<vmem>>, vector<4x1xf32>
    %46 = vector.broadcast %45 : vector<4x1xf32> to vector<4x512xf32>
    %47 = arith.addf %44, %46 : vector<4x512xf32>
    %cst_27 = arith.constant 0.000000e+00 : f32
    %48 = vector.broadcast %cst_27 : f32 to vector<4x512xf32>
    %49 = arith.cmpf ogt, %47, %48 : vector<4x512xf32>
    %c0_28 = arith.constant 0 : index
    %50 = memref.load %arg7[%c0_28] : memref<2xf32, #tpu.memory_space<smem>>
    %51 = vector.broadcast %50 : f32 to vector<4x512xf32>
    %52 = arith.mulf %51, %47 : vector<4x512xf32>
    %53 = arith.select %49, %47, %52 : vector<4x512xi1>, vector<4x512xf32>
    %c0_29 = arith.constant 0 : index
    %c0_30 = arith.constant 0 : index
    %54 = vector.load %arg5[%c0_29, %c0_30] : memref<4x4xf32, #tpu.memory_space<vmem>>, vector<4x4xf32>
    %cst_31 = arith.constant dense<0.000000e+00> : vector<4x512xf32>
    %55 = tpu.matmul %54, %53, %cst_31 {dimension_numbers = #tpu.dot_dimension_numbers<[1], [0], [0], [1], [0, 0, 1, 1], [], []>} : vector<4x4xf32>, vector<4x512xf32>, vector<4x512xf32> -> vector<4x512xf32>
    %c0_32 = arith.constant 0 : index
    %c0_33 = arith.constant 0 : index
    %56 = vector.load %arg6[%c0_32, %c0_33] : memref<4x1xf32, #tpu.memory_space<vmem>>, vector<4x1xf32>
    %57 = vector.broadcast %56 : vector<4x1xf32> to vector<4x512xf32>
    %58 = arith.addf %55, %57 : vector<4x512xf32>
    %cst_34 = arith.constant 0.000000e+00 : f32
    %59 = vector.broadcast %cst_34 : f32 to vector<4x512xf32>
    %60 = arith.cmpf ogt, %58, %59 : vector<4x512xf32>
    %c1_35 = arith.constant 1 : index
    %61 = memref.load %arg7[%c1_35] : memref<2xf32, #tpu.memory_space<smem>>
    %62 = vector.broadcast %61 : f32 to vector<4x512xf32>
    %63 = arith.mulf %62, %58 : vector<4x512xf32>
    %64 = arith.select %60, %58, %63 : vector<4x512xi1>, vector<4x512xf32>
    %65 = tpu.concatenate %0, %64 in 0 : vector<4x512xf32>, vector<4x512xf32> -> vector<8x512xf32>
    %c0_36 = arith.constant 0 : index
    %c0_37 = arith.constant 0 : index
    %66 = vector.load %arg8[%c0_36, %c0_37] : memref<8x512xf32, #tpu.memory_space<vmem>>, vector<8x512xf32>
    tpu.vector_store %arg8[%c0_36, %c0_37], %65 {strides = array<i32>} : memref<8x512xf32, #tpu.memory_space<vmem>>, vector<8x512xf32>,
    return
  }
  func.func @transform_0(%arg0: i32) -> (i32, i32) {
    %c0_i32 = arith.constant 0 : i32
    %c0_i32_0 = arith.constant 0 : i32
    return %c0_i32, %arg0 : i32, i32
  }
  func.func @transform_1(%arg0: i32) -> (i32, i32) {
    %c0_i32 = arith.constant 0 : i32
    %c0_i32_0 = arith.constant 0 : i32
    %c0_i32_1 = arith.constant 0 : i32
    return %c0_i32, %c0_i32_0 : i32, i32
  }
  func.func @transform_2(%arg0: i32) -> (i32, i32) {
    %c0_i32 = arith.constant 0 : i32
    %c0_i32_0 = arith.constant 0 : i32
    %c0_i32_1 = arith.constant 0 : i32
    return %c0_i32, %c0_i32_0 : i32, i32
  }
  func.func @transform_3(%arg0: i32) -> (i32, i32) {
    %c0_i32 = arith.constant 0 : i32
    %c0_i32_0 = arith.constant 0 : i32
    %c0_i32_1 = arith.constant 0 : i32
    return %c0_i32, %c0_i32_0 : i32, i32
  }
  func.func @transform_4(%arg0: i32) -> (i32, i32) {
    %c0_i32 = arith.constant 0 : i32
    %c0_i32_0 = arith.constant 0 : i32
    %c0_i32_1 = arith.constant 0 : i32
    return %c0_i32, %c0_i32_0 : i32, i32
  }
  func.func @transform_5(%arg0: i32) -> (i32, i32) {
    %c0_i32 = arith.constant 0 : i32
    %c0_i32_0 = arith.constant 0 : i32
    %c0_i32_1 = arith.constant 0 : i32
    return %c0_i32, %c0_i32_0 : i32, i32
  }
  func.func @transform_6(%arg0: i32) -> i32 {
    %c0_i32 = arith.constant 0 : i32
    %c0_i32_0 = arith.constant 0 : i32
    return %c0_i32 : i32
  }
  func.func @transform_7(%arg0: i32) -> (i32, i32) {
    %c0_i32 = arith.constant 0 : i32
    %c0_i32_0 = arith.constant 0 : i32
    return %c0_i32, %arg0 : i32, i32
  }
}

</mosaic_0001>

<bundles_post_ra>
// kernel: initial_velocity_forward.1
= control target key start
LH: loop header
LB: loop body
LE: loop exit
PB: predicated region body
PF: predicated region fallthrough
CT: control target
= control target key end

     0   :  { %12 = vsyncpa [#allocation4], 0  ;;  %s1203_s0 = inlined_call_operand.vmem [shape: f32[4,512], index: 0, kind: input, shape index: {}]   ;;  %s1204_s1 = inlined_call_operand.vmem [shape: f32[9,512], index: 1, kind: input, shape index: {}]   ;;  %s1205_s2 = inlined_call_operand.vmem [shape: f32[4,36], index: 2, kind: input, shape index: {}]   ;;  %s1206_s3 = inlined_call_operand.vmem [shape: f32[4,1], index: 3, kind: input, shape index: {}]   ;;  %s1207_s4 = inlined_call_operand.vmem [shape: f32[4,4], index: 4, kind: input, shape index: {}]   ;;  %s1208_s5 = inlined_call_operand.vmem [shape: f32[4,1], index: 5, kind: input, shape index: {}]   ;;  %s1209_s6 = inlined_call_operand.vmem [shape: f32[2], index: 6, kind: input, shape index: {}]   ;;  %s1210_s7 = inlined_call_operand.vmem [shape: f32[8,512], index: 7, kind: output, shape index: {}]  }
   0x1   :  { %s31_s26 = sshll.u32 %s1209_s6, 4  ;;  %s32_s26 = int_to_ptr.vmem [resolvable:$true] %s31_s26 }
   0x2   :  { %s907_s27 = scalar_lea.vmem %s32_s26, 16  ;;  %p912_p1 = scmp.lt.s32.totalorder %s32_s26, %s32_s26 }
   0x3   :  { %p908_p0 = scmp.ne.s32.totalorder %s32_s26, %s907_s27  ;;  %p913_p2 = scmp.lt.s32.totalorder %s907_s27, %s907_s27 }
   0x5   :  { %p914_p3 = por %p913_p2, %p912_p1 }
   0x7   :  { %p915_p4 = pnand %p914_p3, %p908_p0 }
   0x9   :  { %918 = shalt.err (!%p915_p4)
}
   0xa   :  { %s921_s28 = smov [#allocation3]  }
   0xb   :  { %34 = dma.vmem_to_smem %s32_s26, 16, %s921_s28, [#allocation4]  }
   0xc   :  { %919 = dma.done.wait [#allocation4], 16  }
   0xd   :  { %920 = vsyncadd [#allocation4], 4294967280 }
   0xe   :  { %38 = sfence }
   0xf   :  { %v978_v0 = vld [vmem:[%s1203_s0 + $0x8] sm:$0xff]  ;;  %v983_v1 = vld [vmem:[%s1203_s0] sm:$0xff]  ;;  %s922_s9 = smov 16   ;;  %s923_s0 = smov 1   ;;  %v930_v4 = vmov 0.0   ;;  %v931_v6 = vmov 0   ;;  %v55_v7 = vlaneseq }
  0x10   :  { %96 = vrot.lane.b32.xlu1 %v978_v0, %s922_s9  ;;  %250 = vst [vmem:[#allocation2 + $0x50] sm:$0xf] %v978_v0  ;;  %92 = vrot.lane.b32.xlu0 %v983_v1, %s922_s9  ;;  %248 = vst [vmem:[#allocation2 + $0x40] sm:$0xf] %v983_v1  ;;  %v991_v2 = vcombine.high %v978_v0, %v978_v0  ;;  %v995_v3 = vcombine.high %v983_v1, %v983_v1  ;;  %s924_s10 = smov 17   ;;  %s925_s11 = smov 15  }
  0x11   :  { %s926_s12 = smov 127   ;;  %s927_s13 = smov 112   ;;  %560 = vmatprep.mubr.f32.mxu0 %v930_v4  ;;  %631 = vmatprep.mubr.f32.mxu1 %v930_v4  ;;  %v473_v5 = vld [vmem:[%s1206_s3] sm:$0xf]  ;;  %v65_v8 = vshrl.u32 %v55_v7, 7  ;;  %v1034_v9 = vand.u32 127, %v55_v7 }
  0x12   :  { %251 = vst [vmem:[#allocation2 + $0x58] sm:$0xf] %v991_v2  ;;  %249 = vst [vmem:[#allocation2 + $0x48] sm:$0xf] %v995_v3  ;;  %s928_s14 = smov 113   ;;  %s929_s15 = smov 111   ;;  %903 = vset.pattern.permute.xlu0 %v931_v6  ;;  %904 = vset.pattern.permute.xlu1 %v931_v6 }
  0x13   :  { %v1036_v10 = vsub.s32 0, %v65_v8  ;;  %v1038_v11 = vsub.s32 3, %v65_v8  ;;  %v1040_v12 = vsub.s32 1, %v65_v8  ;;  %v1042_v13 = vsub.s32 2, %v65_v8 }
  0x14   :  { %98 = vrot.lane.b32.xlu1 %v991_v2, %s922_s9  ;;  %94 = vrot.lane.b32.xlu0 %v995_v3, %s922_s9  ;;  %v856_v14 = vld [vmem:[%s1204_s1 + $0x1] ss:$8 sm:$0xf]  ;;  %vm100_vm0 = vcmp.lt.s32.totalorder %v1034_v9, 16  ;;  %vm200_vm1 = vcmp.lt.s32.totalorder %v1034_v9, 1  ;;  %vm57_vm2 = vcmp.lt.s32.totalorder %v1034_v9, 17 }
  0x15   :  { %v858_v17 = vld [vmem:[%s1204_s1 + $0x3] ss:$8 sm:$0xf]  ;;  %v111_v18 = vrot.slane %v856_v14, %v1036_v10  ;;  %v123_v19 = vrot.slane %v856_v14, %v1038_v11  ;;  %v115_v20 = vrot.slane %v856_v14, %v1040_v12  ;;  %v119_v21 = vrot.slane %v856_v14, %v1042_v13  ;;  %v62_v44 = vld [vmem:[%s1204_s1] ss:$8 sm:$0xf] }
  0x16   :  { %v215_v24 = vrot.slane %v858_v17, %v1040_v12  ;;  %v211_v41 = vrot.slane %v858_v17, %v1036_v10  ;;  %v219_v42 = vrot.slane %v858_v17, %v1042_v13  ;;  %v223_v43 = vrot.slane %v858_v17, %v1038_v11  ;;  %v857_v6 = vld [vmem:[%s1204_s1 + $0x2] ss:$8 sm:$0xf] }
  0x17   :  { %v71_v54 = vrot.slane %v62_v44, %v1040_v12  ;;  %v67_v62 = vrot.slane %v62_v44, %v1036_v10  ;;  %v75_v63 = vrot.slane %v62_v44, %v1042_v13  ;;  %vm156_vm3 = vcmp.lt.s32.totalorder %v1034_v9, 15 }
  0x18   :  { %194 = vrot.lane.b32.xlu1 %v995_v3, %s923_s0  ;;  %192 = vrot.lane.b32.xlu0 %v983_v1, %s923_s0  ;;  %vm260_vm4 = vcmp.lt.s32.totalorder %v1034_v9, 127  ;;  %vm360_vm5 = vcmp.lt.s32.totalorder %v1034_v9, 112  ;;  %vm316_vm6 = vcmp.lt.s32.totalorder %v1034_v9, 113  ;;  %vm416_vm7 = vcmp.lt.s32.totalorder %v1034_v9, 111  ;;  %v452_v9 = vld [vmem:[%s1205_s2] sm:$0xf] }
  0x19   :  { %vm483_vm8 = vcmask 1043456   ;;  %vm479_vm9 = vcmask 293888   ;;  %vm659_vm14 = vcmask 31744  }
  0x1c   :  { %198 = vrot.lane.b32.xlu1 %v991_v2, %s923_s0  ;;  %196 = vrot.lane.b32.xlu0 %v978_v0, %s923_s0 }
  0x20   :  { %49 = vrot.lane.b32.xlu1 %v995_v3, %s924_s10  ;;  %47 = vrot.lane.b32.xlu0 %v983_v1, %s924_s10 }
  0x24   :  { %53 = vrot.lane.b32.xlu1 %v991_v2, %s924_s10  ;;  %51 = vrot.lane.b32.xlu0 %v978_v0, %s924_s10  ;;  %s642_s10 = sld [smem:[#allocation3]] }
  0x28   :  { %150 = vrot.lane.b32.xlu1 %v995_v3, %s925_s11  ;;  %148 = vrot.lane.b32.xlu0 %v983_v1, %s925_s11 }
  0x2c   :  { %154 = vrot.lane.b32.xlu1 %v991_v2, %s925_s11  ;;  %152 = vrot.lane.b32.xlu0 %v978_v0, %s925_s11 }
  0x30   :  { %254 = vrot.lane.b32.xlu1 %v995_v3, %s926_s12  ;;  %252 = vrot.lane.b32.xlu0 %v983_v1, %s926_s12 }
  0x34   :  { %258 = vrot.lane.b32.xlu1 %v991_v2, %s926_s12  ;;  %256 = vrot.lane.b32.xlu0 %v978_v0, %s926_s12  ;;  %s875_s12 = sld [smem:[#allocation3 + $0x1]] }
  0x38   :  { %354 = vrot.lane.b32.xlu1 %v995_v3, %s927_s13  ;;  %352 = vrot.lane.b32.xlu0 %v983_v1, %s927_s13 }
  0x3c   :  { %358 = vrot.lane.b32.xlu1 %v991_v2, %s927_s13  ;;  %356 = vrot.lane.b32.xlu0 %v978_v0, %s927_s13 }
  0x40   :  { %310 = vrot.lane.b32.xlu1 %v995_v3, %s928_s14  ;;  %308 = vrot.lane.b32.xlu0 %v983_v1, %s928_s14 }
  0x44   :  { %314 = vrot.lane.b32.xlu1 %v991_v2, %s928_s14  ;;  %312 = vrot.lane.b32.xlu0 %v978_v0, %s928_s14 }
  0x48   :  { %410 = vrot.lane.b32.xlu1 %v995_v3, %s929_s15  ;;  %408 = vrot.lane.b32.xlu0 %v983_v1, %s929_s15 }
  0x4c   :  { %414 = vrot.lane.b32.xlu1 %v991_v2, %s929_s15  ;;  %412 = vrot.lane.b32.xlu0 %v978_v0, %s929_s15 }
  0x50   :  { %476 = vperm.xlu0 %903, %v473_v5   ;;  %v79_v5 = vrot.slane %v62_v44, %v1038_v11 }
  0x82   :  { %v97_v15 = vpop.permute.xlu1 %96  ;;  %v93_v16 = vpop.permute.xlu0 %92 }
  0x86   :  { %v99_v22 = vpop.permute.xlu1 %98  ;;  %v95_v23 = vpop.permute.xlu0 %94 }
  0x87   :  { %v101_v25 = vsel %vm100_vm0, %v97_v15, %v99_v22  ;;  %v104_v26 = vsel %vm100_vm0, %v99_v22, %v93_v16  ;;  %v102_v27 = vsel %vm100_vm0, %v95_v23, %v97_v15  ;;  %v103_v28 = vsel %vm100_vm0, %v93_v16, %v95_v23 }
  0x88   :  { %v128_v29 = vmul.f32 %v111_v18, %v104_v26  ;;  %v131_v30 = vmul.f32 %v123_v19, %v101_v25  ;;  %v129_v31 = vmul.f32 %v115_v20, %v103_v28  ;;  %v130_v32 = vmul.f32 %v119_v21, %v102_v27  ;;  %v859_v28 = vld [vmem:[%s1204_s1 + $0x5] ss:$8 sm:$0xf] }
  0x89   :  { %v171_v20 = vrot.slane %v857_v6, %v1040_v12  ;;  %v167_v25 = vrot.slane %v857_v6, %v1036_v10  ;;  %v175_v26 = vrot.slane %v857_v6, %v1042_v13  ;;  %v179_v27 = vrot.slane %v857_v6, %v1038_v11 }
  0x8a   :  { %v136_v33 = vrot.slane %v128_v29, 4  ;;  %v139_v34 = vrot.slane %v131_v30, 4  ;;  %v137_v35 = vrot.slane %v129_v31, 4  ;;  %v138_v36 = vrot.slane %v130_v32, 4  ;;  %v195_v37 = vpop.permute.xlu1 %194  ;;  %v193_v38 = vpop.permute.xlu0 %192 }
  0x8b   :  { %v203_v39 = vsel %vm200_vm1, %v193_v38, %v195_v37  ;;  %v279_v44 = vrot.slane %v859_v28, %v1042_v13 }
  0x8c   :  { %144 = vst [vmem:[#allocation2] sm:$0xf0] %v136_v33  ;;  %147 = vst [vmem:[#allocation2 + $0x18] sm:$0xf0] %v139_v34  ;;  %v229_v40 = vmul.f32 %v215_v24, %v203_v39 }
  0x8d   :  { %145 = vst [vmem:[#allocation2 + $0x8] sm:$0xf0] %v137_v35  ;;  %146 = vst [vmem:[#allocation2 + $0x10] sm:$0xf0] %v138_v36 }
  0x8e   :  { %v237_v45 = vrot.slane %v229_v40, 4  ;;  %v199_v46 = vpop.permute.xlu1 %198  ;;  %v197_v47 = vpop.permute.xlu0 %196 }
  0x8f   :  { %v204_v48 = vsel %vm200_vm1, %v199_v46, %v193_v38  ;;  %v201_v49 = vsel %vm200_vm1, %v197_v47, %v199_v46  ;;  %v202_v50 = vsel %vm200_vm1, %v195_v37, %v197_v47  ;;  %v271_v37 = vrot.slane %v859_v28, %v1036_v10  ;;  %v861_v47 = vld [vmem:[%s1204_s1 + $0x7] ss:$8 sm:$0xf] }
  0x90   :  { %245 = vst [vmem:[#allocation2 + $0x28] sm:$0xf0] %v237_v45  ;;  %v228_v51 = vmul.f32 %v211_v41, %v204_v48  ;;  %v230_v52 = vmul.f32 %v219_v42, %v202_v50  ;;  %v231_v53 = vmul.f32 %v223_v43, %v201_v49  ;;  %v283_v42 = vrot.slane %v859_v28, %v1038_v11 }
  0x91   :  { %v275_v43 = vrot.slane %v859_v28, %v1040_v12 }
  0x92   :  { %v236_v55 = vrot.slane %v228_v51, 4  ;;  %v238_v56 = vrot.slane %v230_v52, 4  ;;  %v239_v57 = vrot.slane %v231_v53, 4  ;;  %v50_v58 = vpop.permute.xlu1 %49  ;;  %v48_v59 = vpop.permute.xlu0 %47 }
  0x93   :  { %v60_v60 = vsel %vm57_vm2, %v48_v59, %v50_v58 }
  0x94   :  { %244 = vst [vmem:[#allocation2 + $0x20] sm:$0xf0] %v236_v55  ;;  %246 = vst [vmem:[#allocation2 + $0x30] sm:$0xf0] %v238_v56  ;;  %v85_v61 = vmul.f32 %v71_v54, %v60_v60 }
  0x95   :  { %247 = vst [vmem:[#allocation2 + $0x38] sm:$0xf0] %v239_v57 }
  0x96   :  { %89 = vst [vmem:[#allocation2 + $0x8] sm:$0xf] %v85_v61  ;;  %v54_v7 = vpop.permute.xlu1 %53  ;;  %v52_v8 = vpop.permute.xlu0 %51 }
  0x97   :  { %v61_v14 = vsel %vm57_vm2, %v54_v7, %v48_v59  ;;  %v58_v15 = vsel %vm57_vm2, %v52_v8, %v54_v7  ;;  %v59_v16 = vsel %vm57_vm2, %v50_v58, %v52_v8  ;;  %v371_v58 = vrot.slane %v861_v47, %v1036_v10 }
  0x98   :  { %v84_v17 = vmul.f32 %v67_v62, %v61_v14  ;;  %v86_v18 = vmul.f32 %v75_v63, %v59_v16  ;;  %v87_v19 = vmul.f32 %v79_v5, %v58_v15 }
  0x9a   :  { %88 = vst [vmem:[#allocation2] sm:$0xf] %v84_v17  ;;  %90 = vst [vmem:[#allocation2 + $0x10] sm:$0xf] %v86_v18  ;;  %v151_v21 = vpop.permute.xlu1 %150  ;;  %v149_v22 = vpop.permute.xlu0 %148 }
  0x9b   :  { %91 = vst [vmem:[#allocation2 + $0x18] sm:$0xf] %v87_v19  ;;  %v159_v23 = vsel %vm156_vm3, %v149_v22, %v151_v21 }
  0x9c   :  { %v185_v24 = vmul.f32 %v171_v20, %v159_v23  ;;  %v379_v23 = vrot.slane %v861_v47, %v1042_v13 }
  0x9d   :  { %v454_v45 = vld [vmem:[#allocation2 + $0x8] sm:$0xff] }
  0x9e   :  { %189 = vst [vmem:[#allocation2 + $0x28] sm:$0xf] %v185_v24  ;;  %v155_v29 = vpop.permute.xlu1 %154  ;;  %v153_v30 = vpop.permute.xlu0 %152  ;;  %v860_v24 = vld [vmem:[%s1204_s1 + $0x6] ss:$8 sm:$0xf] }
  0x9f   :  { %v160_v31 = vsel %vm156_vm3, %v155_v29, %v149_v22  ;;  %v157_v32 = vsel %vm156_vm3, %v153_v30, %v155_v29  ;;  %v158_v33 = vsel %vm156_vm3, %v151_v21, %v153_v30  ;;  %v383_v21 = vrot.slane %v861_v47, %v1038_v11 }
  0xa0   :  { %v184_v34 = vmul.f32 %v167_v25, %v160_v31  ;;  %v186_v35 = vmul.f32 %v175_v26, %v158_v33  ;;  %v187_v36 = vmul.f32 %v179_v27, %v157_v32  ;;  %v375_v22 = vrot.slane %v861_v47, %v1040_v12 }
  0xa1   :  { %v453_v59 = vld [vmem:[#allocation2] sm:$0xff]  ;;  %v455_v16 = vld [vmem:[#allocation2 + $0x10] sm:$0xff] }
  0xa2   :  { %188 = vst [vmem:[#allocation2 + $0x20] sm:$0xf] %v184_v34  ;;  %190 = vst [vmem:[#allocation2 + $0x30] sm:$0xf] %v186_v35  ;;  %v255_v38 = vpop.permute.xlu1 %254  ;;  %v253_v39 = vpop.permute.xlu0 %252  ;;  %v456_v15 = vld [vmem:[#allocation2 + $0x18] sm:$0xff]  ;;  %v327_v34 = vrot.slane %v860_v24, %v1036_v10 }
  0xa3   :  { %191 = vst [vmem:[#allocation2 + $0x38] sm:$0xf] %v187_v36  ;;  %v263_v40 = vsel %vm260_vm4, %v253_v39, %v255_v38 }
  0xa4   :  { %v288_v41 = vmul.f32 %v271_v37, %v263_v40 }
  0xa5   :  { %v458_v46 = vld [vmem:[#allocation2 + $0x28] sm:$0xff] }
  0xa6   :  { %v296_v48 = vrot.slane %v288_v41, 4  ;;  %v259_v49 = vpop.permute.xlu1 %258  ;;  %v257_v50 = vpop.permute.xlu0 %256  ;;  %v876_v51 = vpack.c.bf16 %v458_v46, %v454_v45  ;;  %v862_v45 = vld [vmem:[%s1204_s1 + $0x20] ss:$8 sm:$0xf] }
  0xa7   :  { %v264_v52 = vsel %vm260_vm4, %v259_v49, %v253_v39  ;;  %v261_v53 = vsel %vm260_vm4, %v257_v50, %v259_v49  ;;  %v262_v54 = vsel %vm260_vm4, %v255_v38, %v257_v50 }
  0xa8   :  { %304 = vst [vmem:[#allocation2 + $0x40] sm:$0xf0] %v296_v48  ;;  %v291_v55 = vmul.f32 %v283_v42, %v264_v52  ;;  %v289_v56 = vmul.f32 %v275_v43, %v262_v54  ;;  %v290_v57 = vmul.f32 %v279_v44, %v261_v53  ;;  %877 = vmatprep.subr.bf16.mxu0 %v876_v51 }
  0xa9   :  { %v457_v60 = vld [vmem:[#allocation2 + $0x20] sm:$0xff]  ;;  %v459_v62 = vld [vmem:[#allocation2 + $0x30] sm:$0xff]  ;;  %v339_v42 = vrot.slane %v860_v24, %v1038_v11  ;;  %v331_v43 = vrot.slane %v860_v24, %v1040_v12  ;;  %v335_v44 = vrot.slane %v860_v24, %v1042_v13  ;;  %v427_v54 = vrot.slane %v862_v45, %v1036_v10 }
  0xaa   :  { %v460_v61 = vld [vmem:[#allocation2 + $0x38] sm:$0xff]  ;;  %v299_v63 = vrot.slane %v291_v55, 4  ;;  %v297_v5 = vrot.slane %v289_v56, 4  ;;  %v298_v6 = vrot.slane %v290_v57, 4  ;;  %v355_v7 = vpop.permute.xlu1 %354  ;;  %v353_v8 = vpop.permute.xlu0 %352  ;;  %v878_v14 = vpack.c.bf16 %v457_v60, %v453_v59 }
  0xab   :  { %v363_v17 = vsel %vm360_vm5, %v353_v8, %v355_v7  ;;  %v884_v18 = vpack.c.bf16 %v460_v61, %v456_v15  ;;  %v886_v19 = vpack.c.bf16 %v459_v62, %v455_v16  ;;  %v439_v59 = vrot.slane %v862_v45, %v1038_v11 }
  0xac   :  { %307 = vst [vmem:[#allocation2 + $0x58] sm:$0xf0] %v299_v63  ;;  %305 = vst [vmem:[#allocation2 + $0x48] sm:$0xf0] %v297_v5  ;;  %v388_v20 = vmul.f32 %v371_v58, %v363_v17  ;;  %879 = vmatpush1.bf16.msra.mxu0 %v878_v14  ;;  %v431_v60 = vrot.slane %v862_v45, %v1040_v12  ;;  %v435_v61 = vrot.slane %v862_v45, %v1042_v13 }
  0xad   :  { %306 = vst [vmem:[#allocation2 + $0x50] sm:$0xf0] %v298_v6  ;;  %885 = vmatprep.subr.bf16.mxu1 %v884_v18 }
  0xae   :  { %v396_v25 = vrot.slane %v388_v20, 4  ;;  %887 = vmatpush1.bf16.msra.mxu1 %v886_v19  ;;  %v359_v26 = vpop.permute.xlu1 %358  ;;  %v357_v27 = vpop.permute.xlu0 %356 }
  0xaf   :  { %v364_v28 = vsel %vm360_vm5, %v359_v26, %v353_v8  ;;  %v361_v29 = vsel %vm360_vm5, %v357_v27, %v359_v26  ;;  %v362_v30 = vsel %vm360_vm5, %v355_v7, %v357_v27 }
  0xb0   :  { %404 = vst [vmem:[#allocation2 + $0x60] sm:$0xf0] %v396_v25  ;;  %v391_v31 = vmul.f32 %v383_v21, %v364_v28  ;;  %v389_v32 = vmul.f32 %v375_v22, %v362_v30  ;;  %v390_v33 = vmul.f32 %v379_v23, %v361_v29  ;;  %v461_v21 = vld [vmem:[#allocation2 + $0x40] sm:$0xff] }
  0xb1   :  { %v653_v28 = vld [vmem:[%s1208_s5] sm:$0xf] }
  0xb2   :  { %v399_v35 = vrot.slane %v391_v31, 4  ;;  %v397_v36 = vrot.slane %v389_v32, 4  ;;  %v398_v37 = vrot.slane %v390_v33, 4  ;;  %v311_v38 = vpop.permute.xlu1 %310  ;;  %v309_v39 = vpop.permute.xlu0 %308  ;;  %656 = vperm.xlu1 %904, %v653_v28   ;;  %v643_v31 = vstv %s642_s10 }
  0xb3   :  { %v319_v40 = vsel %vm316_vm6, %v309_v39, %v311_v38  ;;  %v462_v7 = vld [vmem:[#allocation2 + $0x48] sm:$0xff]  ;;  %v464_v15 = vld [vmem:[#allocation2 + $0x58] sm:$0xff] }
  0xb4   :  { %407 = vst [vmem:[#allocation2 + $0x78] sm:$0xf0] %v399_v35  ;;  %405 = vst [vmem:[#allocation2 + $0x68] sm:$0xf0] %v397_v36  ;;  %v344_v41 = vmul.f32 %v327_v34, %v319_v40  ;;  %v463_v16 = vld [vmem:[#allocation2 + $0x50] sm:$0xff] }
  0xb5   :  { %406 = vst [vmem:[#allocation2 + $0x70] sm:$0xf0] %v398_v37 }
  0xb6   :  { %348 = vst [vmem:[#allocation2 + $0x60] sm:$0xf] %v344_v41  ;;  %v315_v46 = vpop.permute.xlu1 %314  ;;  %v313_v47 = vpop.permute.xlu0 %312 }
  0xb7   :  { %v320_v48 = vsel %vm316_vm6, %v315_v46, %v309_v39  ;;  %v317_v49 = vsel %vm316_vm6, %v313_v47, %v315_v46  ;;  %v318_v50 = vsel %vm316_vm6, %v311_v38, %v313_v47 }
  0xb8   :  { %v347_v51 = vmul.f32 %v339_v42, %v320_v48  ;;  %v345_v52 = vmul.f32 %v331_v43, %v318_v50  ;;  %v346_v53 = vmul.f32 %v335_v44, %v317_v49  ;;  %v652_v44 = vld [vmem:[%s1207_s4] sm:$0xf]  ;;  %v822_v50 = vstv %s875_s12 }
  0xba   :  { %351 = vst [vmem:[#allocation2 + $0x78] sm:$0xf] %v347_v51  ;;  %349 = vst [vmem:[#allocation2 + $0x68] sm:$0xf] %v345_v52  ;;  %v411_v55 = vpop.permute.xlu1 %410  ;;  %v409_v56 = vpop.permute.xlu0 %408 }
  0xbb   :  { %350 = vst [vmem:[#allocation2 + $0x70] sm:$0xf] %v346_v53  ;;  %v419_v57 = vsel %vm416_vm7, %v409_v56, %v411_v55 }
  0xbc   :  { %v444_v58 = vmul.f32 %v427_v54, %v419_v57 }
  0xbd   :  { %v465_v12 = vld [vmem:[#allocation2 + $0x60] sm:$0xff] }
  0xbe   :  { %448 = vst [vmem:[#allocation2 + $0x80] sm:$0xf] %v444_v58  ;;  %v415_v62 = vpop.permute.xlu1 %414  ;;  %v413_v63 = vpop.permute.xlu0 %412  ;;  %v882_v23 = vpack.c.bf16 %v465_v12, %v461_v21 }
  0xbf   :  { %v420_v10 = vsel %vm416_vm7, %v415_v62, %v409_v56  ;;  %v417_v5 = vsel %vm416_vm7, %v413_v63, %v415_v62  ;;  %v418_v6 = vsel %vm416_vm7, %v411_v55, %v413_v63 }
  0xc0   :  { %v447_v8 = vmul.f32 %v439_v59, %v420_v10  ;;  %v445_v14 = vmul.f32 %v431_v60, %v418_v6  ;;  %v446_v11 = vmul.f32 %v435_v61, %v417_v5 }
  0xc1   :  { %v466_v13 = vld [vmem:[#allocation2 + $0x68] sm:$0xff]  ;;  %v468_v17 = vld [vmem:[#allocation2 + $0x78] sm:$0xff] }
  0xc2   :  { %v467_v18 = vld [vmem:[#allocation2 + $0x70] sm:$0xff]  ;;  %451 = vst [vmem:[#allocation2 + $0x98] sm:$0xf] %v447_v8  ;;  %449 = vst [vmem:[#allocation2 + $0x88] sm:$0xf] %v445_v14  ;;  %v880_v19 = vpack.c.bf16 %v466_v13, %v462_v7  ;;  %v888_v20 = vpack.c.bf16 %v468_v17, %v464_v15 }
  0xc3   :  { %450 = vst [vmem:[#allocation2 + $0x90] sm:$0xf] %v446_v11  ;;  %v890_v22 = vpack.c.bf16 %v467_v18, %v463_v16 }
  0xc4   :  { %881 = vmatprep.subr.bf16.mxu0 %v880_v19  ;;  %889 = vmatprep.subr.bf16.mxu1 %v888_v20 }
  0xc5   :  { %883 = vmatpush1.bf16.msra.mxu0 %v882_v23  ;;  %891 = vmatpush1.bf16.msra.mxu1 %v890_v22  ;;  %v469_v27 = vld [vmem:[#allocation2 + $0x80] sm:$0xf] }
  0xc9   :  { %v470_v24 = vld [vmem:[#allocation2 + $0x88] sm:$0xf]  ;;  %v472_v25 = vld [vmem:[#allocation2 + $0x98] sm:$0xf] }
  0xca   :  { %v471_v26 = vld [vmem:[#allocation2 + $0x90] sm:$0xf]  ;;  %863 = vmatprep.subr.msk.mxu0 %vm483_vm8, %v470_v24  ;;  %866 = vmatprep.subr.msk.mxu1 %vm483_vm8, %v472_v25 }
  0xcb   :  { %864 = vmatpush1.msk.msra.mxu0 %vm483_vm8, %v469_v27  ;;  %867 = vmatpush1.msk.msra.mxu1 %vm483_vm8, %v471_v26 }
  0xcc   :  { %865 = vmatmul.mubr.msk.f32.vlgmr.msra.gmra.mrb[0].mxu0 %vm479_vm9, %v452_v9  ;;  %868 = vmatmul.mubr.msk.f32.vlgmr.msra.gmra.mrb[0].mxu1 %vm479_vm9, %v452_v9 }
  0xcd   :  { %739 = vmatprep.mubr.f32.mxu0 %v930_v4  ;;  %810 = vmatprep.mubr.f32.mxu1 %v930_v4 }
  0xcf   :  { %v477_v29 = vpop.permute.xlu0 %476 }
 0x131   :  { %v657_v47 = vpop.permute.xlu1 %656 }
 0x19f   :  { %v633_v30 = vpop.f32.mrb[0].mxu1  ;;  %v562_v32 = vpop.f32.mrb[0].mxu0 }
 0x1a0   :  { %v634_v33 = vadd.f32 %v633_v30, %v477_v29  ;;  %v563_v34 = vadd.f32 %v562_v32, %v477_v29  ;;  %v564_v35 = vpop.f32.mrb[1].mxu0  ;;  %v635_v36 = vpop.f32.mrb[1].mxu1 }
 0x1a1   :  { %v565_v37 = vadd.f32 %v564_v35, %v477_v29  ;;  %v636_v38 = vadd.f32 %v635_v36, %v477_v29 }
 0x1a2   :  { %v646_v39 = vmul.f32 %v643_v31, %v634_v33  ;;  %vm638_vm10 = vcmp.gt.f32.partialorder %v563_v34, 0.0  ;;  %v644_v40 = vmul.f32 %v643_v31, %v563_v34  ;;  %vm640_vm11 = vcmp.gt.f32.partialorder %v634_v33, 0.0 }
 0x1a3   :  { %vm639_vm12 = vcmp.gt.f32.partialorder %v565_v37, 0.0  ;;  %v645_v4 = vmul.f32 %v643_v31, %v565_v37  ;;  %vm641_vm13 = vcmp.gt.f32.partialorder %v636_v38, 0.0  ;;  %v647_v41 = vmul.f32 %v643_v31, %v636_v38 }
 0x1a4   :  { %v648_v45 = vsel %vm638_vm10, %v563_v34, %v644_v40  ;;  %v650_v46 = vsel %vm640_vm11, %v634_v33, %v646_v39 }
 0x1a5   :  { %v649_v42 = vsel %vm639_vm12, %v565_v37, %v645_v4  ;;  %v651_v43 = vsel %vm641_vm13, %v636_v38, %v647_v41 }
 0x1a6   :  { %869 = vmatprep.subr.msk.mxu0 %vm483_vm8, %v649_v42  ;;  %872 = vmatprep.subr.msk.mxu1 %vm483_vm8, %v651_v43 }
 0x1a7   :  { %870 = vmatpush1.msk.msra.mxu0 %vm483_vm8, %v648_v45  ;;  %873 = vmatpush1.msk.msra.mxu1 %vm483_vm8, %v650_v46 }
 0x1a8   :  { %871 = vmatmul.mubr.msk.f32.vlgmr.msra.gmra.mrb[2].mxu0 %vm659_vm14, %v652_v44  ;;  %874 = vmatmul.mubr.msk.f32.vlgmr.msra.gmra.mrb[2].mxu1 %vm659_vm14, %v652_v44 }
 0x27b   :  { %v741_v48 = vpop.f32.mrb[2].mxu0  ;;  %v812_v49 = vpop.f32.mrb[2].mxu1 }
 0x27c   :  { %v742_v51 = vadd.f32 %v741_v48, %v657_v47  ;;  %v813_v52 = vadd.f32 %v812_v49, %v657_v47  ;;  %v743_v53 = vpop.f32.mrb[3].mxu0  ;;  %v814_v54 = vpop.f32.mrb[3].mxu1 }
 0x27d   :  { %v744_v55 = vadd.f32 %v743_v53, %v657_v47  ;;  %v815_v56 = vadd.f32 %v814_v54, %v657_v47 }
 0x27e   :  { %vm817_vm15 = vcmp.gt.f32.partialorder %v742_v51, 0.0  ;;  %vm819_vm0 = vcmp.gt.f32.partialorder %v813_v52, 0.0  ;;  %v823_v57 = vmul.f32 %v822_v50, %v742_v51  ;;  %v825_v58 = vmul.f32 %v822_v50, %v813_v52 }
 0x27f   :  { %vm818_vm1 = vcmp.gt.f32.partialorder %v744_v55, 0.0  ;;  %v824_v59 = vmul.f32 %v822_v50, %v744_v55  ;;  %vm820_vm2 = vcmp.gt.f32.partialorder %v815_v56, 0.0  ;;  %v826_v60 = vmul.f32 %v822_v50, %v815_v56 }
 0x280   :  { %v827_v61 = vsel %vm817_vm15, %v742_v51, %v823_v57  ;;  %v829_v62 = vsel %vm819_vm0, %v813_v52, %v825_v58 }
 0x281   :  { %v835_v63 = vrot.slane %v827_v61, 4  ;;  %v837_v10 = vrot.slane %v829_v62, 4  ;;  %v828_v5 = vsel %vm818_vm1, %v744_v55, %v824_v59  ;;  %v830_v6 = vsel %vm820_vm2, %v815_v56, %v826_v60 }
 0x282   :  { %v836_v7 = vrot.slane %v828_v5, 4  ;;  %v838_v8 = vrot.slane %v830_v6, 4 }
 0x283   :  { %v843_v14 = vsel %vm483_vm8, %v983_v1, %v835_v63  ;;  %v845_v11 = vsel %vm483_vm8, %v978_v0, %v837_v10 }
 0x284   :  { %847 = vst [vmem:[%s1210_s7] sm:$0xff] %v843_v14  ;;  %849 = vst [vmem:[%s1210_s7 + $0x10] sm:$0xff] %v845_v11  ;;  %v844_v15 = vsel %vm483_vm8, %v995_v3, %v836_v7  ;;  %v846_v12 = vsel %vm483_vm8, %v991_v2, %v838_v8 }
 0x285   :  { %848 = vst [vmem:[%s1210_s7 + $0x8] sm:$0xff] %v844_v15  ;;  %850 = vst [vmem:[%s1210_s7 + $0x18] sm:$0xff] %v846_v12 }
 0x286   :  { %855 = vsyncpa [#allocation4], 1 }

</bundles_post_ra>
